<compile_context>
chip_gen: v6e
topology: v6e:2x2x1
jax: 0.10.0
libtpu: 0.0.40
codegen_flags: <defaults>
</compile_context>

<pallas_src>
import functools
import math

import jax
import jax.numpy as jnp
from jax import lax
from jax.experimental import pallas as pl
from jax.experimental.pallas import tpu as pltpu


def _tpu_generation_defaults():
    """(num_parallel, max_block_bytes, vmem_limit_bytes) per TPU generation."""
    kind = ""
    try:
        kind = jax.devices()[0].device_kind.lower()
    except Exception:
        pass
    if "v7" in kind:                    # 2 TCs/chip, ~3.2 TB/s HBM, 64 MiB VMEM/TC
        return 2, 4 << 20, 48 << 20
    if "v6" in kind:                    # 1 TC/chip, 128 MiB VMEM
        return 1, 4 << 20, 48 << 20
    if "v5p" in kind or "v4" in kind:   # megacore: 2 TCs, 128 MiB VMEM
        return 2, 4 << 20, 48 << 20
    # v5e / unknown: 16 MiB default scoped VMEM -> modest blocks, default limit.
    return 1, 2 << 20, None


def _fold_chunk(x_ref, y_ref, acc_ref, r0, fold_rows, lane_width):
    """Accumulate squared diffs of a fold_rows x lane_width chunk (VPU only)."""
    xb = x_ref[pl.ds(r0, fold_rows), :].astype(jnp.float32)
    yb = y_ref[pl.ds(r0, fold_rows), :].astype(jnp.float32)
    d = xb - yb
    acc_ref[...] += jnp.sum((d * d).reshape(fold_rows // 8, 8, lane_width), axis=0)


def _mse_partial_kernel(x_ref, y_ref, o_ref, acc_ref, *,
                        block_rows, lane_width, fold_rows):
    """Per-lane squared-error partial sums for one (block_rows, lane) block."""
    # Zero the VMEM vector accumulator at the start of this shard's reduction.
    @pl.when(pl.program_id(1) == 0)
    def _():
        acc_ref[...] = jnp.zeros_like(acc_ref)

    n_chunks = block_rows // fold_rows
    if n_chunks == 1:
        _fold_chunk(x_ref, y_ref, acc_ref, 0, fold_rows, lane_width)
    else:
        # Bounded f32 temporaries: fold in fold_rows-row chunks straight into acc.
        def body(c, carry):
            r0 = pl.multiple_of(c * fold_rows, fold_rows)
            _fold_chunk(x_ref, y_ref, acc_ref, r0, fold_rows, lane_width)
            return carry
        lax.fori_loop(0, n_chunks, body, 0, unroll=True)

    # Single cross-lane (XLU) reduce per shard, at the last step only.
    @pl.when(pl.program_id(1) == pl.num_programs(1) - 1)
    def _():
        o_ref[0, 0] = jnp.sum(acc_ref[...])


def denoising_loss(inp, target, *, lane_width=None, max_block_bytes=None,
                   num_parallel=None, min_pallas_elements=1 << 18,
                   force_pallas=False):
    """MSE between flattened input and target (scalar, float32)."""
    x = inp.reshape(-1)
    y = target.reshape(-1)
    assert x.size == y.size, "input/target must have matching flattened sizes"
    total = x.size

    def jax_mse(xa, ya):
        return jnp.mean((xa.astype(jnp.float32) - ya.astype(jnp.float32)) ** 2)

    # Tiny inputs: XLA's fused elementwise+reduce beats kernel-launch overhead.
    if not force_pallas and total < min_pallas_elements:
        return jax_mse(x, y)

    det_np, det_bytes, vmem_limit = _tpu_generation_defaults()
    if num_parallel is None:
        num_parallel = det_np
    if max_block_bytes is None:
        max_block_bytes = det_bytes

    itemsize = jnp.dtype(inp.dtype).itemsize
    blk_unit = {4: 8, 2: 16, 1: 32}.get(itemsize, 8)   # packed sublane tile

    # Prefer a lane width that divides total: the 2-D reshape is then a free
    # bitcast (no materialized copy at all).
    if lane_width is None:
        lane_width = None
        for cand in (2048, 1024, 512, 256, 128):
            if total % cand == 0 and total // cand >= blk_unit:
                lane_width = cand
                break
        if lane_width is None:
            lane_width = 1024

    rows = total // lane_width
    if rows < blk_unit:
        return jax_mse(x, y)              # too small for one lane-dense block
    if rows // num_parallel < blk_unit:
        num_parallel = 1                  # not enough rows to split across cores

    # Block rows: byte-capped (narrow dtypes automatically get more rows),
    # rounded to the dtype's packed-sublane multiple, at least one block/shard.
    rows_cap = max(blk_unit,
                   (max_block_bytes // (lane_width * itemsize)) // blk_unit * blk_unit)
    avail = (rows // num_parallel) // blk_unit * blk_unit     # >= blk_unit
    block_rows = min(rows_cap, avail)
    super_block = block_rows * num_parallel
    steps = rows // super_block                               # >= 1
    rows_main = steps * super_block
    main = rows_main * lane_width
    fold_rows = math.gcd(block_rows, 128)                     # divides block_rows

    # Pad-free layout. No jnp.pad anywhere; grid never reads rows >= rows_main.
    if total % lane_width == 0:
        x2 = x.reshape(-1, lane_width)                        # free bitcast
        y2 = y.reshape(-1, lane_width)
    else:
        # Rare fallback: a single slice of the main region (still no padded copy).
        x2 = x[:rows * lane_width].reshape(rows, lane_width)
        y2 = y[:rows * lane_width].reshape(rows, lane_width)

    kernel = functools.partial(_mse_partial_kernel, block_rows=block_rows,
                               lane_width=lane_width, fold_rows=fold_rows)

    partials = pl.pallas_call(
        kernel,
        out_shape=jax.ShapeDtypeStruct((num_parallel, 1), jnp.float32),
        grid=(num_parallel, steps),
        in_specs=[
            pl.BlockSpec((block_rows, lane_width),
                         lambda p, s: (p * steps + s, 0)),
            pl.BlockSpec((block_rows, lane_width),
                         lambda p, s: (p * steps + s, 0)),
        ],
        out_specs=pl.BlockSpec((1, 1), lambda p, s: (p, 0),
                               memory_space=pltpu.SMEM),
        scratch_shapes=[pltpu.VMEM((8, lane_width), jnp.float32)],
        compiler_params=pltpu.CompilerParams(
            dimension_semantics=("parallel", "arbitrary"),
            vmem_limit_bytes=vmem_limit),
        cost_estimate=pl.CostEstimate(
            flops=3 * main,
            transcendentals=0,
            bytes_accessed=2 * main * itemsize + 4 * num_parallel),
    )(x2, y2)

    sq_sum = jnp.sum(partials)
    # Sub-block tail (< one super-block): fused elementwise+reduce in JAX.
    if main < total:
        tail = (x[main:].astype(jnp.float32) - y[main:].astype(jnp.float32))
        sq_sum = sq_sum + jnp.sum(tail * tail)

    # Mean over the TRUE element count.
    return sq_sum * jnp.float32(1.0 / total)


if __name__ == "__main__":
    key = jax.random.PRNGKey(0)
    k1, k2, k3, k4, k5, k6, k7, k8 = jax.random.split(key, 8)

    # 1) Small NCHW shapes consistent with a denoising conv-AE reconstruction loss.
    x = jax.random.normal(k1, (2, 4, 16, 16), dtype=jnp.float32)
    t = jax.random.normal(k2, (2, 4, 16, 16), dtype=jnp.float32)
    loss = jax.block_until_ready(denoising_loss(x, t, force_pallas=True))
    ref = jnp.mean((x.reshape(2, -1) - t.reshape(2, -1)) ** 2)
    assert jnp.allclose(loss, ref, rtol=1e-5, atol=1e-6), (loss, ref)

    # 2) Multi-step accumulation per shard (small blocks, several grid steps).
    x2 = jax.random.normal(k3, (4, 4, 32, 32), dtype=jnp.float32)
    t2 = jax.random.normal(k4, (4, 4, 32, 32), dtype=jnp.float32)
    loss2 = jax.block_until_ready(
        denoising_loss(x2, t2, lane_width=128, max_block_bytes=8 * 1024,
                       force_pallas=True))
    ref2 = jnp.mean((x2.reshape(4, -1) - t2.reshape(4, -1)) ** 2)
    assert jnp.allclose(loss2, ref2, rtol=1e-5, atol=1e-6), (loss2, ref2)

    # 3) Pad-free tail path: element count not a multiple of the super-block.
    x3 = jax.random.normal(k5, (2, 4, 33, 32), dtype=jnp.float32)
    t3 = jax.random.normal(k6, (2, 4, 33, 32), dtype=jnp.float32)
    loss3 = jax.block_until_ready(
        denoising_loss(x3, t3, lane_width=128, max_block_bytes=4 * 1024,
                       force_pallas=True))
    ref3 = jnp.mean((x3.reshape(2, -1) - t3.reshape(2, -1)) ** 2)
    assert jnp.allclose(loss3, ref3, rtol=1e-5, atol=1e-6), (loss3, ref3)

    # 4) Larger blocks exercising the chunked (fori_loop) fold path.
    x4 = jax.random.normal(k7, (8, 8, 32, 32), dtype=jnp.float32)
    t4 = jax.random.normal(k8, (8, 8, 32, 32), dtype=jnp.float32)
    loss4 = jax.block_until_ready(
        denoising_loss(x4, t4, lane_width=128, max_block_bytes=256 * 1024,
                       force_pallas=True))
    ref4 = jnp.mean((x4.reshape(8, -1) - t4.reshape(8, -1)) ** 2)
    assert jnp.allclose(loss4, ref4, rtol=1e-5, atol=1e-6), (loss4, ref4)

    print("KERNEL_OK")
</pallas_src>

<mosaic_0001>
module attributes {stable_mosaic.version = 11 : i64} {
  func.func @_mse_partial_kernel(%arg0: i32, %arg1: i32, %arg2: memref<8x256xf32, #tpu.memory_space<vmem>>, %arg3: memref<8x256xf32, #tpu.memory_space<vmem>>, %arg4: memref<1x1xf32, #tpu.memory_space<smem>>, %arg5: memref<8x256xf32, #tpu.memory_space<vmem>>) attributes {dimension_semantics = [#tpu.dimension_semantics<parallel>, #tpu.dimension_semantics<arbitrary>], iteration_bounds = array<i64: 1, 1>, scalar_prefetch = 0 : i64, scratch_operands = 1 : i64, tpu.core_type = #tpu.core_type<tc>, window_params = [{transform_indices = @transform_0, window_bounds = array<i64: 8, 256>}, {transform_indices = @transform_1, window_bounds = array<i64: 8, 256>}, {transform_indices = @transform_2, window_bounds = array<i64: 1, 1>}]} {
    %c0_i32 = arith.constant 0 : i32
    %0 = arith.cmpi eq, %arg1, %c0_i32 : i32
    %1 = arith.extui %0 : i1 to i32
    %c0_i32_0 = arith.constant 0 : i32
    %2 = arith.cmpi ne, %1, %c0_i32_0 : i32
    scf.if %2 {
      %cst_10 = arith.constant 0.000000e+00 : f32
      %15 = vector.broadcast %cst_10 : f32 to vector<8x256xf32>
      %c0_11 = arith.constant 0 : index
      %c0_12 = arith.constant 0 : index
      %16 = vector.load %arg5[%c0_11, %c0_12] : memref<8x256xf32, #tpu.memory_space<vmem>>, vector<8x256xf32>
      tpu.vector_store %arg5[%c0_11, %c0_12], %15 {strides = array<i32>} : memref<8x256xf32, #tpu.memory_space<vmem>>, vector<8x256xf32>,
    } else {
    }
    %c0 = arith.constant 0 : index
    %c0_1 = arith.constant 0 : index
    %3 = vector.load %arg2[%c0, %c0_1] : memref<8x256xf32, #tpu.memory_space<vmem>>, vector<8x256xf32>
    %c0_2 = arith.constant 0 : index
    %c0_3 = arith.constant 0 : index
    %4 = vector.load %arg3[%c0_2, %c0_3] : memref<8x256xf32, #tpu.memory_space<vmem>>, vector<8x256xf32>
    %5 = arith.subf %3, %4 : vector<8x256xf32>
    %c0_4 = arith.constant 0 : index
    %c0_5 = arith.constant 0 : index
    %6 = vector.load %arg5[%c0_4, %c0_5] : memref<8x256xf32, #tpu.memory_space<vmem>>, vector<8x256xf32>
    %7 = arith.mulf %5, %5 : vector<8x256xf32>
    %8 = vector.shape_cast %7 : vector<8x256xf32> to vector<1x8x256xf32>
    %cst = arith.constant dense<0.000000e+00> : vector<8x256xf32>
    %9 = vector.multi_reduction <add>, %8, %cst [0] : vector<1x8x256xf32> to vector<8x256xf32>
    %10 = arith.addf %6, %9 : vector<8x256xf32>
    %c0_6 = arith.constant 0 : index
    %c0_7 = arith.constant 0 : index
    %11 = vector.load %arg5[%c0_6, %c0_7] : memref<8x256xf32, #tpu.memory_space<vmem>>, vector<8x256xf32>
    tpu.vector_store %arg5[%c0_6, %c0_7], %10 {strides = array<i32>} : memref<8x256xf32, #tpu.memory_space<vmem>>, vector<8x256xf32>,
    %c0_i32_8 = arith.constant 0 : i32
    %12 = arith.cmpi eq, %arg1, %c0_i32_8 : i32
    %13 = arith.extui %12 : i1 to i32
    %c0_i32_9 = arith.constant 0 : i32
    %14 = arith.cmpi ne, %13, %c0_i32_9 : i32
    scf.if %14 {
      %c0_10 = arith.constant 0 : index
      %c0_11 = arith.constant 0 : index
      %15 = vector.load %arg5[%c0_10, %c0_11] : memref<8x256xf32, #tpu.memory_space<vmem>>, vector<8x256xf32>
      %16 = vector.shape_cast %15 : vector<8x256xf32> to vector<1x8x256xf32>
      %cst_12 = arith.constant dense<0.000000e+00> : vector<1xf32>
      %17 = vector.multi_reduction <add>, %16, %cst_12 [1, 2] : vector<1x8x256xf32> to vector<1xf32>
      %18 = vector.shape_cast %17 : vector<1xf32> to vector<1x1x1xf32>
      %19 = vector.extract %18[0, 0, 0] : f32 from vector<1x1x1xf32>
      %c0_13 = arith.constant 0 : index
      %c0_14 = arith.constant 0 : index
      %20 = memref.load %arg4[%c0_13, %c0_14] : memref<1x1xf32, #tpu.memory_space<smem>>
      memref.store %19, %arg4[%c0_13, %c0_14] : memref<1x1xf32, #tpu.memory_space<smem>>
    } else {
    }
    return
  }
  func.func @transform_0(%arg0: i32, %arg1: i32) -> (i32, i32) {
    %c1_i32 = arith.constant 1 : i32
    %0 = arith.muli %arg0, %c1_i32 : i32
    %1 = arith.addi %0, %arg1 : i32
    %c0_i32 = arith.constant 0 : i32
    %c0_i32_0 = arith.constant 0 : i32
    return %1, %c0_i32 : i32, i32
  }
  func.func @transform_1(%arg0: i32, %arg1: i32) -> (i32, i32) {
    %c1_i32 = arith.constant 1 : i32
    %0 = arith.muli %arg0, %c1_i32 : i32
    %1 = arith.addi %0, %arg1 : i32
    %c0_i32 = arith.constant 0 : i32
    %c0_i32_0 = arith.constant 0 : i32
    return %1, %c0_i32 : i32, i32
  }
  func.func @transform_2(%arg0: i32, %arg1: i32) -> (i32, i32) {
    %c0_i32 = arith.constant 0 : i32
    %c0_i32_0 = arith.constant 0 : i32
    return %arg0, %c0_i32 : i32, i32
  }
}

</mosaic_0001>

<bundles_post_ra>
// kernel: tpu_custom_call.1
= control target key start
LH: loop header
LB: loop body
LE: loop exit
PB: predicated region body
PF: predicated region fallthrough
CT: control target
= control target key end

     0   :  { %7 = vsyncpa [#allocation4], 0  ;;  %s186_s0 = inlined_call_operand.hbm [shape: f32[8,256], index: 0, kind: input, shape index: {}]   ;;  %s187_s1 = inlined_call_operand.hbm [shape: f32[8,256], index: 1, kind: input, shape index: {}]   ;;  %s188_s2 = inlined_call_operand.hbm [shape: f32[1,1], index: 2, kind: output, shape index: {}]  }
   0x1   :  { %8 = vsyncpa [#allocation7], 0 }
   0x2   :  { %9 = vsyncpa [#allocation5], 0  ;;  %s159_s9 = smov [#allocation3]   ;;  %s160_s11 = smov [#allocation6]  }
   0x3   :  { %s20_s10 = sshll.u32 %s159_s9, 4  ;;  %s34_s12 = sshll.u32 %s160_s11, 4  ;;  %s21_s10 = int_to_ptr.vmem [resolvable:$true] %s20_s10  ;;  %s35_s12 = int_to_ptr.vmem [resolvable:$true] %s34_s12 }
   0x4   :  { %s113_s13 = scalar_lea.vmem %s21_s10, 256  ;;  %p118_p1 = scmp.lt.s32.totalorder %s21_s10, %s21_s10 }
   0x5   :  { %p114_p0 = scmp.ne.s32.totalorder %s21_s10, %s113_s13  ;;  %p119_p2 = scmp.lt.s32.totalorder %s113_s13, %s113_s13 }
   0x7   :  { %p120_p3 = por %p119_p2, %p118_p1 }
   0x9   :  { %p121_p4 = pnand %p120_p3, %p114_p0 }
   0xb   :  { %124 = shalt.err (!%p121_p4)
}
   0xc   :  { %23 = dma.hbm_to_vmem [thread:$0]  %s186_s0, 256, %s21_s10, [#allocation4]  }
   0xd   :  { %s133_s16 = scalar_lea.vmem %s35_s12, 256  ;;  %p138_p6 = scmp.lt.s32.totalorder %s35_s12, %s35_s12 }
   0xe   :  { %p134_p5 = scmp.ne.s32.totalorder %s35_s12, %s133_s16  ;;  %p139_p7 = scmp.lt.s32.totalorder %s133_s16, %s133_s16 }
  0x10   :  { %p140_p8 = por %p139_p7, %p138_p6 }
  0x12   :  { %p141_p9 = pnand %p140_p8, %p134_p5 }
  0x14   :  { %144 = shalt.err (!%p141_p9)
}
  0x15   :  { %37 = dma.hbm_to_vmem [thread:$0]  %s187_s1, 256, %s35_s12, [#allocation7]  }
  0x16   :  { %153 = dma.done.wait [#allocation4], 256  }
  0x17   :  { %154 = vsyncadd [#allocation4], 4294967040 }
  0x18   :  { %155 = dma.done.wait [#allocation7], 256  }
  0x19   :  { %156 = vsyncadd [#allocation7], 4294967040  ;;  %v52_v0 = vld [vmem:[#allocation3] sm:$0xff]  ;;  %v53_v1 = vld [vmem:[#allocation3 + $0x8] sm:$0xff]  ;;  %s161_s1 = smov [#allocation8]  }
  0x1a   :  { %v54_v2 = vld [vmem:[#allocation6] sm:$0xff]  ;;  %v55_v3 = vld [vmem:[#allocation6 + $0x8] sm:$0xff] }
  0x1b   :  { %v56_v4 = vsub.f32 %v52_v0, %v54_v2  ;;  %v57_v5 = vsub.f32 %v53_v1, %v55_v3 }
  0x1d   :  { %v60_v6 = vmul.f32 %v56_v4, %v56_v4  ;;  %v61_v7 = vmul.f32 %v57_v5, %v57_v5 }
  0x1f   :  { %v73_v8 = vadd.f32 %v61_v7, %v60_v6 }
  0x21   :  { %74 = vadd.xlane.f32.xlu0 %v73_v8 }
  0xaa   :  { %v75_v9 = vpop.xlane.xlu0 %74 }
  0xab   :  { %v76_v10 = vrot.slane %v75_v9, 4 }
  0xad   :  { %v77_v11 = vadd.f32 %v76_v10, %v75_v9 }
  0xaf   :  { %v78_v12 = vrot.slane %v77_v11, 2 }
  0xb1   :  { %v79_v13 = vadd.f32 %v78_v12, %v77_v11 }
  0xb3   :  { %v80_v14 = vrot.slane %v79_v13, 1 }
  0xb5   :  { %v81_v15 = vadd.f32 %v80_v14, %v79_v13 }
  0xb7   :  { %100 = vpush %v81_v15 }
  0xe8   :  { %s101_s0 = spop %100 }
  0xe9   :  { %84 = sst [smem:[#allocation8]] %s101_s0 }
  0xea   :  { %92 = dma.smem_to_hbm %s161_s1, 16, %s188_s2, [#allocation5]  }
  0xeb   :  { %157 = dma.done.wait [#allocation5], 16  }
  0xec   :  { %158 = vsyncadd [#allocation5], 4294967280 }
  0xed   :  { %96 = sfence }
  0xee   :  { %97 = vsyncpa [#allocation4], 1 }
  0xef   :  { %98 = vsyncpa [#allocation7], 1 }
  0xf0   :  { %99 = vsyncpa [#allocation5], 1 }

</bundles_post_ra>
